<compile_context>
chip_gen: v5e
topology: v5e:2x2
jax: 0.10.0
libtpu: 0.0.40
codegen_flags: <defaults>
</compile_context>

<pallas_src>
import functools

import jax
import jax.numpy as jnp
from jax import lax
from jax.experimental import pallas as pl
from jax.experimental.pallas import tpu as pltpu


def _round_up(x, m):
    return ((x + m - 1) // m) * m


# ---------------------------------------------------------------------------
# Kernel
# ---------------------------------------------------------------------------
def actor_kernel(ar_ref, x_ref, w1_ref, b1_ref, w2_ref, b2_ref, w3_ref, b3_ref,
                 o_ref, *, state_transposed):
    """Computes one (A, TB) tile of actions^T (batch on the lane axis)."""
    w1 = w1_ref[...]
    cdt = w1.dtype                       # MXU-input dtype (bf16 by default, f32 optional)
    x = x_ref[...].astype(cdt)
    if state_transposed:
        # x is already (S, TB): plain matmul, no per-step relayout of the state block.
        h1 = jnp.dot(w1, x, preferred_element_type=jnp.float32)
    else:
        # x is (TB, S): contract last dims of (H, S) and (TB, S) -> (H, TB).
        h1 = lax.dot_general(w1, x, (((1,), (1,)), ((), ())),
                             preferred_element_type=jnp.float32)
    h1 = jnp.maximum(h1 + b1_ref[...], 0.0)                                      # (H, TB)
    h2 = jnp.dot(w2_ref[...], h1.astype(cdt), preferred_element_type=jnp.float32)
    h2 = jnp.maximum(h2 + b2_ref[...], 0.0)                                      # (H, TB)
    h3 = jnp.dot(w3_ref[...], h2.astype(cdt), preferred_element_type=jnp.float32)
    a = jnp.tanh(h3 + b3_ref[...]) * ar_ref[0, 0]                                # (A, TB)
    o_ref[...] = a.astype(o_ref.dtype)


# ---------------------------------------------------------------------------
# Param prep (call once after init / after each optimizer step, NOT per forward)
# ---------------------------------------------------------------------------
def prepare_actor_params(params, compute_dtype=jnp.bfloat16):
    """Convert PyTorch-layout Linear params to kernel layout.

    Weights stay in the native (out_features, in_features) layout, cast to the MXU
    compute dtype (bf16 default: ~3x fewer MXU passes, half the weight bytes; pass
    jnp.float32 for exact-f32 numerics). Biases become (out_features, 1) f32 columns
    added after the f32 accumulation.
    """
    cdt = compute_dtype
    return {
        "w1": jnp.asarray(params["w1"], cdt),
        "b1": jnp.asarray(params["b1"], jnp.float32)[:, None],
        "w2": jnp.asarray(params["w2"], cdt),
        "b2": jnp.asarray(params["b2"], jnp.float32)[:, None],
        "w3": jnp.asarray(params["w3"], cdt),
        "b3": jnp.asarray(params["b3"], jnp.float32)[:, None],
    }


# ---------------------------------------------------------------------------
# Batch-tile selection
# ---------------------------------------------------------------------------
def _per_row_vmem_bytes(S, H, A, state_transposed):
    """Rough per-batch-row VMEM footprint: double-buffered in/out blocks plus
    in-kernel intermediates, accounting for (8,128) layout padding."""
    if state_transposed:
        in_b = 2 * _round_up(S, 8) * 4           # (S, TB) f32 block, 2 buffers
        x_cast = _round_up(S, 8) * 2             # bf16 copy of x
    else:
        in_b = 2 * _round_up(S, 128) * 4         # (TB, S) f32 block lane-pads S -> 128
        x_cast = _round_up(S, 128) * 2
    out_b = 2 * _round_up(A, 8) * 4              # (A, TB) f32 block, 2 buffers
    inter = (2 * H + A) * 4 + 2 * H * 2 + x_cast  # h1/h2/h3 f32 + bf16 casts
    return in_b + out_b + inter + 64             # + slack


def _select_batch_tile(B, S, H, A, state_transposed):
    """HBM-bandwidth-derived TB cap (so per-step DMA >> ~0.35us step overhead),
    clamped by a conservative VMEM budget, with >= 2 grid steps for large B."""
    if B <= 128:
        return B                                  # single exact-fit block, no padding
    kind = ""
    try:
        kind = jax.devices()[0].device_kind.lower()
    except Exception:
        pass
    if "v5" in kind:
        cap = 8192                                # ~0.8 TB/s HBM
    elif "v6" in kind:
        cap = 16384                               # ~1.3-1.4 TB/s
    else:
        cap = 32768                               # v7x (~3.2 TB/s) / unknown
    budget = 24 * 1024 * 1024
    per_row = _per_row_vmem_bytes(S, H, A, state_transposed)
    cap = min(cap, max(128, (budget // per_row) // 128 * 128))
    b128 = _round_up(B, 128)
    half = _round_up(pl.cdiv(b128, 2), 128)       # ensure >= 2 grid steps when possible
    return min(cap, half)


# ---------------------------------------------------------------------------
# Forward wrapper
# ---------------------------------------------------------------------------
def actor_forward(state, kparams, action_range, *, batch_tile=None,
                  state_transposed=False, transpose_output=True):
    """Actor forward pass.

    state: (B, state_dim) f32, or (state_dim, B) if state_transposed=True
           (transposing once at the producer keeps the input block lane-dense and
            avoids a per-step relayout in the kernel).
    kparams: output of prepare_actor_params (hoisted one-time param prep).
    Returns (B, action_dim); pass transpose_output=False to get (action_dim, B)
    and skip the wrapper transpose's extra HBM round trip.
    """
    w1, b1 = kparams["w1"], kparams["b1"]
    w2, b2 = kparams["w2"], kparams["b2"]
    w3, b3 = kparams["w3"], kparams["b3"]
    H, S = w1.shape
    A = w3.shape[0]
    if state_transposed:
        assert state.shape[0] == S
        B = state.shape[1]
    else:
        assert state.shape[1] == S
        B = state.shape[0]

    TB = batch_tile if batch_tile is not None else _select_batch_tile(
        B, S, H, A, state_transposed)
    grid = (pl.cdiv(B, TB),)                      # ragged last block, no jnp.pad

    ar = jnp.full((1, 1), action_range, jnp.float32)
    const2 = lambda i: (0, 0)
    if state_transposed:
        state_spec = pl.BlockSpec((S, TB), lambda i: (0, i))
    else:
        state_spec = pl.BlockSpec((TB, S), lambda i: (i, 0))

    flops = 2 * B * (S * H + H * H + H * A)
    bytes_accessed = 4 * B * (S + A) + 2 * (S * H + H * H + H * A) + 4 * (2 * H + A)
    vmem_limit = int(min(64 * 1024 * 1024,
                         max(32 * 1024 * 1024,
                             2 * TB * _per_row_vmem_bytes(S, H, A, state_transposed))))

    kernel = functools.partial(actor_kernel, state_transposed=state_transposed)

    out_t = pl.pallas_call(
        kernel,
        out_shape=jax.ShapeDtypeStruct((A, B), jnp.float32),
        grid=grid,
        in_specs=[
            # action_range scalar -> SMEM (no recompile when its value changes)
            pl.BlockSpec((1, 1), const2, memory_space=pltpu.MemorySpace.SMEM),
            # batch tile of the state, streamed / double-buffered along the grid
            state_spec,
            # weights & biases: constant index maps -> VMEM-resident across steps
            pl.BlockSpec((H, S), const2),
            pl.BlockSpec((H, 1), const2),
            pl.BlockSpec((H, H), const2),
            pl.BlockSpec((H, 1), const2),
            pl.BlockSpec((A, H), const2),
            pl.BlockSpec((A, 1), const2),
        ],
        out_specs=pl.BlockSpec((A, TB), lambda i: (0, i)),
        compiler_params=pltpu.CompilerParams(
            dimension_semantics=("parallel",),
            vmem_limit_bytes=vmem_limit),
        cost_estimate=pl.CostEstimate(flops=flops, transcendentals=B * A,
                                      bytes_accessed=bytes_accessed),
    )(ar, state, w1, b1, w2, b2, w3, b3)

    return out_t.T if transpose_output else out_t


# ---------------------------------------------------------------------------
# Init / reference
# ---------------------------------------------------------------------------
def init_actor_params(key, state_dim, action_dim):
    """Deterministic init matching PyTorch nn.Linear default (U[-1/sqrt(fan_in), +])."""
    def linear_init(k, in_f, out_f):
        kw, kb = jax.random.split(k)
        bound = 1.0 / jnp.sqrt(in_f)
        w = jax.random.uniform(kw, (out_f, in_f), jnp.float32, -bound, bound)
        b = jax.random.uniform(kb, (out_f,), jnp.float32, -bound, bound)
        return w, b

    k1, k2, k3 = jax.random.split(key, 3)
    w1, b1 = linear_init(k1, state_dim, 16)
    w2, b2 = linear_init(k2, 16, 16)
    w3, b3 = linear_init(k3, 16, action_dim)
    return {"w1": w1, "b1": b1, "w2": w2, "b2": b2, "w3": w3, "b3": b3}


def actor_reference(state, params, action_range):
    """Pure-JAX reference mirroring the PyTorch forward."""
    h = jnp.maximum(state @ params["w1"].T + params["b1"], 0.0)
    h = jnp.maximum(h @ params["w2"].T + params["b2"], 0.0)
    return jnp.tanh(h @ params["w3"].T + params["b3"]) * action_range


if __name__ == "__main__":
    key = jax.random.PRNGKey(0)
    k_params, k_state1, k_state2 = jax.random.split(key, 3)

    batch = 2
    state_dim = 8
    action_dim = 4
    action_range = 2.0

    params = init_actor_params(k_params, state_dim, action_dim)
    kparams_bf16 = prepare_actor_params(params)                        # default (bf16 MXU inputs)
    kparams_f32 = prepare_actor_params(params, compute_dtype=jnp.float32)

    # 1) Small-batch check (single exact-fit block), f32 compute path, tight tolerance.
    state = jax.random.normal(k_state1, (batch, state_dim), jnp.float32)
    ref = actor_reference(state, params, action_range)
    out = jax.block_until_ready(actor_forward(state, kparams_f32, action_range))
    assert out.shape == (batch, action_dim)
    assert jnp.allclose(out, ref, atol=2e-5, rtol=1e-4), (out, ref)

    # bf16 compute path (default): same result within bf16 matmul tolerance.
    out_bf = jax.block_until_ready(actor_forward(state, kparams_bf16, action_range))
    assert jnp.allclose(out_bf, ref, atol=5e-2, rtol=5e-2)

    # 2) Multi-tile check: B=260 with a forced 128-row tile -> 3 grid steps, ragged
    #    last block (no jnp.pad of the input; OOB output writes are dropped).
    state2 = jax.random.normal(k_state2, (260, state_dim), jnp.float32)
    ref2 = actor_reference(state2, params, action_range)
    out2 = jax.block_until_ready(
        actor_forward(state2, kparams_f32, action_range, batch_tile=128))
    assert out2.shape == (260, action_dim)
    assert jnp.allclose(out2, ref2, atol=2e-5, rtol=1e-4)

    # 3) Pre-transposed (S, B) state path + transposed (A, B) output
    #    (both lane-dense; no wrapper-side .T).
    out3_t = jax.block_until_ready(
        actor_forward(state2.T, kparams_f32, action_range, batch_tile=128,
                      state_transposed=True, transpose_output=False))
    assert out3_t.shape == (action_dim, 260)
    assert jnp.allclose(out3_t.T, ref2, atol=2e-5, rtol=1e-4)

    # 4) Automatic tile selection on a larger batch (exercises >=2 grid steps, bf16).
    stateL = jax.random.normal(k_state2, (1000, state_dim), jnp.float32)
    refL = actor_reference(stateL, params, action_range)
    outL = jax.block_until_ready(actor_forward(stateL, kparams_bf16, action_range))
    assert outL.shape == (1000, action_dim)
    assert jnp.allclose(outL, refL, atol=5e-2, rtol=5e-2)

    print("KERNEL_OK")
</pallas_src>

<mosaic_0001>
module attributes {stable_mosaic.version = 11 : i64} {
  func.func @actor_kernel(%arg0: i32, %arg1: memref<1x1xf32, #tpu.memory_space<smem>>, %arg2: memref<2x8xf32, #tpu.memory_space<vmem>>, %arg3: memref<16x8xf32, #tpu.memory_space<vmem>>, %arg4: memref<16x1xf32, #tpu.memory_space<vmem>>, %arg5: memref<16x16xf32, #tpu.memory_space<vmem>>, %arg6: memref<16x1xf32, #tpu.memory_space<vmem>>, %arg7: memref<4x16xf32, #tpu.memory_space<vmem>>, %arg8: memref<4x1xf32, #tpu.memory_space<vmem>>, %arg9: memref<4x2xf32, #tpu.memory_space<vmem>>) attributes {dimension_semantics = [#tpu.dimension_semantics<parallel>], iteration_bounds = array<i64: 1>, scalar_prefetch = 0 : i64, scratch_operands = 0 : i64, tpu.core_type = #tpu.core_type<tc>, window_params = [{transform_indices = @transform_0, window_bounds = array<i64: 1, 1>}, {transform_indices = @transform_1, window_bounds = array<i64: 2, 8>}, {pipeline_mode = #tpu.pipeline_mode<synchronous>, transform_indices = @transform_2, window_bounds = array<i64: 16, 8>}, {pipeline_mode = #tpu.pipeline_mode<synchronous>, transform_indices = @transform_3, window_bounds = array<i64: 16, 1>}, {pipeline_mode = #tpu.pipeline_mode<synchronous>, transform_indices = @transform_4, window_bounds = array<i64: 16, 16>}, {pipeline_mode = #tpu.pipeline_mode<synchronous>, transform_indices = @transform_5, window_bounds = array<i64: 16, 1>}, {pipeline_mode = #tpu.pipeline_mode<synchronous>, transform_indices = @transform_6, window_bounds = array<i64: 4, 16>}, {pipeline_mode = #tpu.pipeline_mode<synchronous>, transform_indices = @transform_7, window_bounds = array<i64: 4, 1>}, {transform_indices = @transform_8, window_bounds = array<i64: 4, 2>}]} {
    %c0 = arith.constant 0 : index
    %c0_0 = arith.constant 0 : index
    %0 = vector.load %arg3[%c0, %c0_0] : memref<16x8xf32, #tpu.memory_space<vmem>>, vector<16x8xf32>
    %c0_1 = arith.constant 0 : index
    %c0_2 = arith.constant 0 : index
    %1 = vector.load %arg2[%c0_1, %c0_2] : memref<2x8xf32, #tpu.memory_space<vmem>>, vector<2x8xf32>
    %cst = arith.constant dense<0.000000e+00> : vector<16x2xf32>
    %2 = tpu.matmul %0, %1, %cst {dimension_numbers = #tpu.dot_dimension_numbers<[1], [1], [0], [0], [0, 0, 1, 0], [], []>} : vector<16x8xf32>, vector<2x8xf32>, vector<16x2xf32> -> vector<16x2xf32>
    %c0_3 = arith.constant 0 : index
    %c0_4 = arith.constant 0 : index
    %3 = vector.load %arg4[%c0_3, %c0_4] : memref<16x1xf32, #tpu.memory_space<vmem>>, vector<16x1xf32>
    %4 = vector.broadcast %3 : vector<16x1xf32> to vector<16x2xf32>
    %5 = arith.addf %2, %4 : vector<16x2xf32>
    %cst_5 = arith.constant 0.000000e+00 : f32
    %6 = vector.broadcast %cst_5 : f32 to vector<16x2xf32>
    %7 = arith.maximumf %5, %6 : vector<16x2xf32>
    %c0_6 = arith.constant 0 : index
    %c0_7 = arith.constant 0 : index
    %8 = vector.load %arg5[%c0_6, %c0_7] : memref<16x16xf32, #tpu.memory_space<vmem>>, vector<16x16xf32>
    %cst_8 = arith.constant dense<0.000000e+00> : vector<16x2xf32>
    %9 = tpu.matmul %8, %7, %cst_8 {dimension_numbers = #tpu.dot_dimension_numbers<[1], [0], [0], [1], [0, 0, 1, 1], [], []>} : vector<16x16xf32>, vector<16x2xf32>, vector<16x2xf32> -> vector<16x2xf32>
    %c0_9 = arith.constant 0 : index
    %c0_10 = arith.constant 0 : index
    %10 = vector.load %arg6[%c0_9, %c0_10] : memref<16x1xf32, #tpu.memory_space<vmem>>, vector<16x1xf32>
    %11 = vector.broadcast %10 : vector<16x1xf32> to vector<16x2xf32>
    %12 = arith.addf %9, %11 : vector<16x2xf32>
    %cst_11 = arith.constant 0.000000e+00 : f32
    %13 = vector.broadcast %cst_11 : f32 to vector<16x2xf32>
    %14 = arith.maximumf %12, %13 : vector<16x2xf32>
    %c0_12 = arith.constant 0 : index
    %c0_13 = arith.constant 0 : index
    %15 = vector.load %arg7[%c0_12, %c0_13] : memref<4x16xf32, #tpu.memory_space<vmem>>, vector<4x16xf32>
    %cst_14 = arith.constant dense<0.000000e+00> : vector<4x2xf32>
    %16 = tpu.matmul %15, %14, %cst_14 {dimension_numbers = #tpu.dot_dimension_numbers<[1], [0], [0], [1], [0, 0, 1, 1], [], []>} : vector<4x16xf32>, vector<16x2xf32>, vector<4x2xf32> -> vector<4x2xf32>
    %c0_15 = arith.constant 0 : index
    %c0_16 = arith.constant 0 : index
    %17 = vector.load %arg8[%c0_15, %c0_16] : memref<4x1xf32, #tpu.memory_space<vmem>>, vector<4x1xf32>
    %18 = vector.broadcast %17 : vector<4x1xf32> to vector<4x2xf32>
    %19 = arith.addf %16, %18 : vector<4x2xf32>
    %20 = math.tanh %19 : vector<4x2xf32>
    %c0_17 = arith.constant 0 : index
    %c0_18 = arith.constant 0 : index
    %21 = memref.load %arg1[%c0_17, %c0_18] : memref<1x1xf32, #tpu.memory_space<smem>>
    %22 = vector.broadcast %21 : f32 to vector<4x2xf32>
    %23 = arith.mulf %20, %22 : vector<4x2xf32>
    %c0_19 = arith.constant 0 : index
    %c0_20 = arith.constant 0 : index
    %24 = vector.load %arg9[%c0_19, %c0_20] : memref<4x2xf32, #tpu.memory_space<vmem>>, vector<4x2xf32>
    tpu.vector_store %arg9[%c0_19, %c0_20], %23 {strides = array<i32>} : memref<4x2xf32, #tpu.memory_space<vmem>>, vector<4x2xf32>,
    return
  }
  func.func @transform_0(%arg0: i32) -> (i32, i32) {
    %c0_i32 = arith.constant 0 : i32
    %c0_i32_0 = arith.constant 0 : i32
    %c0_i32_1 = arith.constant 0 : i32
    return %c0_i32, %c0_i32_0 : i32, i32
  }
  func.func @transform_1(%arg0: i32) -> (i32, i32) {
    %c0_i32 = arith.constant 0 : i32
    %c0_i32_0 = arith.constant 0 : i32
    return %arg0, %c0_i32 : i32, i32
  }
  func.func @transform_2(%arg0: i32) -> (i32, i32) {
    %c0_i32 = arith.constant 0 : i32
    %c0_i32_0 = arith.constant 0 : i32
    %c0_i32_1 = arith.constant 0 : i32
    return %c0_i32, %c0_i32_0 : i32, i32
  }
  func.func @transform_3(%arg0: i32) -> (i32, i32) {
    %c0_i32 = arith.constant 0 : i32
    %c0_i32_0 = arith.constant 0 : i32
    %c0_i32_1 = arith.constant 0 : i32
    return %c0_i32, %c0_i32_0 : i32, i32
  }
  func.func @transform_4(%arg0: i32) -> (i32, i32) {
    %c0_i32 = arith.constant 0 : i32
    %c0_i32_0 = arith.constant 0 : i32
    %c0_i32_1 = arith.constant 0 : i32
    return %c0_i32, %c0_i32_0 : i32, i32
  }
  func.func @transform_5(%arg0: i32) -> (i32, i32) {
    %c0_i32 = arith.constant 0 : i32
    %c0_i32_0 = arith.constant 0 : i32
    %c0_i32_1 = arith.constant 0 : i32
    return %c0_i32, %c0_i32_0 : i32, i32
  }
  func.func @transform_6(%arg0: i32) -> (i32, i32) {
    %c0_i32 = arith.constant 0 : i32
    %c0_i32_0 = arith.constant 0 : i32
    %c0_i32_1 = arith.constant 0 : i32
    return %c0_i32, %c0_i32_0 : i32, i32
  }
  func.func @transform_7(%arg0: i32) -> (i32, i32) {
    %c0_i32 = arith.constant 0 : i32
    %c0_i32_0 = arith.constant 0 : i32
    %c0_i32_1 = arith.constant 0 : i32
    return %c0_i32, %c0_i32_0 : i32, i32
  }
  func.func @transform_8(%arg0: i32) -> (i32, i32) {
    %c0_i32 = arith.constant 0 : i32
    %c0_i32_0 = arith.constant 0 : i32
    return %c0_i32, %arg0 : i32, i32
  }
}

</mosaic_0001>

<bundles_post_ra>
// kernel: tpu_custom_call.1
= control target key start
LH: loop header
LB: loop body
LE: loop exit
PB: predicated region body
PF: predicated region fallthrough
CT: control target
= control target key end

     0   :  { %vm45_vm0 = vcmask 64512   ;;  %v179_v1 = vmov 0   ;;  %vm94_vm1 = vcmask 130048   ;;  %vm160_vm2 = vcmask 11264   ;;  %s267_s1 = inlined_call_operand.vmem [shape: f32[2,8], index: 1, kind: input, shape index: {}]   ;;  %s268_s2 = inlined_call_operand.vmem [shape: f32[16,8], index: 2, kind: input, shape index: {}]   ;;  %s269_s3 = inlined_call_operand.vmem [shape: f32[16,1], index: 3, kind: input, shape index: {}]   ;;  %s270_s5 = inlined_call_operand.vmem [shape: f32[16,1], index: 5, kind: input, shape index: {}]   ;;  %s271_s4 = inlined_call_operand.vmem [shape: f32[16,16], index: 4, kind: input, shape index: {}]   ;;  %s272_s7 = inlined_call_operand.vmem [shape: f32[4,1], index: 7, kind: input, shape index: {}]   ;;  %s273_s6 = inlined_call_operand.vmem [shape: f32[4,16], index: 6, kind: input, shape index: {}]   ;;  %s274_s0 = inlined_call_operand.<no memory space> [shape: f32[1,1], index: 0, kind: input, shape index: {}]   ;;  %s275_s8 = inlined_call_operand.vmem [shape: f32[4,2], index: 8, kind: output, shape index: {}]  }
   0x1   :  { %v32_v0 = vld [vmem:[%s267_s1] sm:$0x3]  ;;  %174 = vset.pattern.permute.xlu0 %v179_v1  ;;  %175 = vset.pattern.permute.xlu1 %v179_v1  ;;  %v31_v3 = vld [vmem:[%s268_s2 + $0x8] sm:$0xff]  ;;  %v158_v31 = vstv %s274_s0 }
   0x2   :  { %166 = vmatpush.xpose.msk.msra.mxu0 %vm45_vm0, %v32_v0  ;;  %172 = vmatpush.xpose.msk.msra.mxu3 %vm45_vm0, %v32_v0  ;;  %v30_v2 = vld [vmem:[%s268_s2] sm:$0xff]  ;;  %v34_v4 = vld [vmem:[%s269_s3 + $0x8] sm:$0xff] }
   0x3   :  { %42 = vperm.xlu0 %174, %v34_v4   ;;  %176 = vset.pattern.permute.xlu2 %v179_v1  ;;  %v33_v5 = vld [vmem:[%s269_s3] sm:$0xff]  ;;  %v83_v6 = vld [vmem:[%s270_s5 + $0x8] sm:$0xff] }
   0x4   :  { %91 = vperm.xlu1 %175, %v83_v6   ;;  %v82_v7 = vld [vmem:[%s270_s5] sm:$0xff]  ;;  %v81_v17 = vld [vmem:[%s271_s4 + $0x8] sm:$0xff] }
   0x5   :  { %167 = vmatmul.msk.f32.vlgmr.msra.gmra.mxu0 %vm45_vm0, %v30_v2  ;;  %168 = vmatmul.msk.f32.vlgmr.msra.gmra.mxu3 %vm45_vm0, %v31_v3  ;;  %v80_v16 = vld [vmem:[%s271_s4] sm:$0xff] }
   0x6   :  { %v127_v18 = vld [vmem:[%s272_s7] sm:$0xf] }
   0x7   :  { %130 = vperm.xlu2 %176, %v127_v18   ;;  %v126_v27 = vld [vmem:[%s273_s6] sm:$0xf] }
   0xb   :  { %37 = vperm.xlu0 %174, %v33_v5  }
   0xc   :  { %86 = vperm.xlu1 %175, %v82_v7  }
  0x61   :  { %v131_v28 = vpop.permute.xlu2 %130 }
  0x75   :  { %v43_v8 = vpop.permute.xlu0 %42 }
  0x76   :  { %v92_v19 = vpop.permute.xlu1 %91 }
  0x7d   :  { %v38_v9 = vpop.permute.xlu0 %37 }
  0x7e   :  { %v87_v21 = vpop.permute.xlu1 %86 }
  0x82   :  { %v72_v10 = vpop.f32.mrf.mxu0 }
  0x83   :  { %v73_v12 = vadd.f32 %v72_v10, %v38_v9 }
  0x85   :  { %v78_v15 = vmax.f32 %v73_v12, 0.0 }
  0x88   :  { %v75_v11 = vpop.f32.mrf.mxu3 }
  0x89   :  { %v76_v13 = vadd.f32 %v75_v11, %v43_v8 }
  0x8b   :  { %v79_v14 = vmax.f32 %v76_v13, 0.0 }
  0x8d   :  { %115 = vmatpush.msra.mxu1 %v79_v14 }
  0x8f   :  { %116 = vmatpush.msra.mxu1 %v78_v15 }
  0x90   :  { %169 = vmatmul.msk.f32.vlgmr.msra.gmra.mxu1 %vm94_vm1, %v80_v16 }
  0x98   :  { %170 = vmatmul.msk.f32.gmra.mxu1 %vm94_vm1, %v81_v17 }
 0x10d   :  { %v118_v20 = vpop.f32.mrf.mxu1 }
 0x10e   :  { %v119_v23 = vadd.f32 %v118_v20, %v87_v21 }
 0x110   :  { %v124_v26 = vmax.f32 %v119_v23, 0.0 }
 0x115   :  { %v121_v22 = vpop.f32.mrf.mxu1 }
 0x116   :  { %v122_v24 = vadd.f32 %v121_v22, %v92_v19 }
 0x118   :  { %v125_v25 = vmax.f32 %v122_v24, 0.0 }
 0x11a   :  { %150 = vmatpush.msra.mxu2 %v125_v25 }
 0x11c   :  { %151 = vmatpush.msra.mxu2 %v124_v26 }
 0x11d   :  { %171 = vmatmul.msk.f32.vlgmr.msra.gmra.mxu2 %vm94_vm1, %v126_v27 }
 0x1a0   :  { %v153_v29 = vpop.f32.mrf.mxu2 }
 0x1a1   :  { %v154_v30 = vadd.f32 %v153_v29, %v131_v28 }
 0x1a3   :  { %177 = vtanh.f32 %v154_v30 }
 0x1a9   :  { %v178_v32 = vpop.eup %177 }
 0x1aa   :  { %v159_v33 = vmul.f32 %v178_v32, %v158_v31 }
 0x1ac   :  { %161 = vst.msk [vmem:[%s275_s8] sm:$0xf] %vm160_vm2, %v159_v33 }

</bundles_post_ra>
